<compile_context>
chip_gen: v5e
topology: v5e:2x2
jax: 0.10.0
libtpu: 0.0.40
codegen_flags: <defaults>
</compile_context>

<pallas_src>
import functools

import jax
import jax.numpy as jnp
from jax.experimental import pallas as pl
from jax.experimental.pallas import tpu as pltpu

ALPHA = 1.0
BETA = 1.0
EPS = 1e-8  # F.cosine_similarity default eps


def _round_up(x, m):
    return (x + m - 1) // m * m


def _vmem_capacity_bytes():
    # Trace-time hardware query; fall back to the smallest per-core capacity
    # (v7x: 64 MiB/TC) so the budget is safe on every generation.
    try:
        cap = getattr(pltpu.get_tpu_info(), "vmem_capacity_bytes", None)
        if cap:
            return int(cap)
    except Exception:
        pass
    return 64 * 1024 * 1024


def _loss_kernel(f0_ref, f1_ref, fbg_ref, sw_ref, tot_ref, var_ref,
                 *, alpha, beta, m, batch, block_rows):
    f0 = f0_ref[...].astype(jnp.float32)     # (TB, D)
    f1 = f1_ref[...].astype(jnp.float32)     # (TB, D)
    fbg = fbg_ref[...].astype(jnp.float32)   # (TB, D)
    sw = sw_ref[...].astype(jnp.float32)     # (TB, N, M)

    # ---- switch.var(dim=2).mean(dim=1): unbiased, single pass, no matmul ----
    # var_{b,n} = (sum_m x^2 - (sum_m x)^2 / M) / (M - 1)
    s1 = jnp.sum(sw, axis=2)                                  # (TB, N)
    s2 = jnp.sum(sw * sw, axis=2)                             # (TB, N)
    var_nm = (s2 - s1 * s1 * (1.0 / m)) * (1.0 / (m - 1))     # (TB, N)
    var_b = jnp.mean(var_nm, axis=1, keepdims=True)           # (TB, 1)
    reg = jnp.exp(-var_b) * alpha

    # ---- squared cosine similarities along the feature dim, sqrt-free ----
    d01 = jnp.sum(f0 * f1, axis=1, keepdims=True)
    d0b = jnp.sum(f0 * fbg, axis=1, keepdims=True)
    d1b = jnp.sum(f1 * fbg, axis=1, keepdims=True)
    n0 = jnp.sum(f0 * f0, axis=1, keepdims=True)
    n1 = jnp.sum(f1 * f1, axis=1, keepdims=True)
    nb = jnp.sum(fbg * fbg, axis=1, keepdims=True)

    eps2 = EPS * EPS  # max(sqrt(x), eps)^2 == max(x, eps^2) for x >= 0 (exact)
    c01 = (d01 * d01) * pl.reciprocal(jnp.maximum(n0 * n1, eps2), approx=False)
    c0b = (d0b * d0b) * pl.reciprocal(jnp.maximum(n0 * nb, eps2), approx=False)
    c1b = (d1b * d1b) * pl.reciprocal(jnp.maximum(n1 * nb, eps2), approx=False)

    tot_row = c01 + beta * (c0b + c1b) + reg                  # (TB, 1)

    # ---- mask ragged / out-of-batch rows (no wrapper padding), then reduce ----
    row = jax.lax.broadcasted_iota(jnp.int32, tot_row.shape, 0)
    valid = (pl.program_id(0) * block_rows + row) < batch
    tot_p = jnp.sum(jnp.where(valid, tot_row, 0.0))           # scalar
    var_p = jnp.sum(jnp.where(valid, var_b, 0.0))             # scalar

    # Per-block partial sums written as a fully (8,128)-aligned dense tile
    # (unmasked stores, negligible writeback).
    tot_ref[...] = jnp.broadcast_to(tot_p, tot_ref.shape)
    var_ref[...] = jnp.broadcast_to(var_p, var_ref.shape)


def pallas_loss(feature0, feature1, feature_bg, switch,
                alpha=ALPHA, beta=BETA, block_rows=None):
    B, D = feature0.shape
    _, N, M = switch.shape

    # ---- VMEM budgeting (per-chip): big tiles amortize per-step overhead ----
    vmem_cap = _vmem_capacity_bytes()                # 128 MiB v5e/v6e, 64 MiB v7x
    vmem_limit = min(vmem_cap // 2, 64 * 1024 * 1024)
    tile_budget = max(vmem_limit // 2 - 4 * 1024 * 1024, 2 * 1024 * 1024)

    # Padded VMEM footprint of one batch row across all four input blocks.
    bytes_per_row = 4 * (3 * _round_up(D, 128) + _round_up(N, 8) * _round_up(M, 128))

    if block_rows is None:
        block_rows = tile_budget // max(bytes_per_row, 1)
    tb = max(8, (block_rows // 8) * 8)
    tb = min(tb, _round_up(B, 8))
    if B > 8:
        # Keep >= 2 blocks so the parallel axis can shard across v7x's 2 TCs.
        tb = min(tb, _round_up(-(-B // 2), 8))
    if tb > B:
        tb = B  # whole-array block: block dims == array dims is always legal
    nblk = -(-B // tb)
    grid = (nblk,)

    kernel = functools.partial(_loss_kernel, alpha=float(alpha), beta=float(beta),
                               m=M, batch=B, block_rows=tb)

    NM = N * M
    cost = pl.CostEstimate(
        flops=B * (3 * NM + 4 * N + 12 * D + 40),
        transcendentals=4 * B,
        bytes_accessed=4 * (3 * B * D + B * NM) + nblk * 2 * 8 * 128 * 4,
    )

    tot_parts, var_parts = pl.pallas_call(
        kernel,
        out_shape=(
            jax.ShapeDtypeStruct((nblk, 8, 128), jnp.float32),
            jax.ShapeDtypeStruct((nblk, 8, 128), jnp.float32),
        ),
        grid=grid,
        in_specs=[
            pl.BlockSpec((tb, D), lambda i: (i, 0)),
            pl.BlockSpec((tb, D), lambda i: (i, 0)),
            pl.BlockSpec((tb, D), lambda i: (i, 0)),
            pl.BlockSpec((tb, N, M), lambda i: (i, 0, 0)),
        ],
        out_specs=(
            pl.BlockSpec((1, 8, 128), lambda i: (i, 0, 0)),
            pl.BlockSpec((1, 8, 128), lambda i: (i, 0, 0)),
        ),
        compiler_params=pltpu.CompilerParams(
            dimension_semantics=("parallel",),
            vmem_limit_bytes=vmem_limit,
        ),
        cost_estimate=cost,
    )(feature0, feature1, feature_bg, switch)

    # Finish the two tiny means in plain XLA (per-block partials are already
    # masked in-kernel, so a straight sum is exact).
    loss = jnp.sum(tot_parts[:, 0, 0]) / B
    var_mean = jnp.sum(var_parts[:, 0, 0]) / B
    return loss, var_mean


def _reference_loss(feature0, feature1, feature_bg, switch,
                    alpha=ALPHA, beta=BETA):
    # plain-JAX re-implementation of the PyTorch forward, for verification
    m = switch.shape[2]
    mean_m = jnp.mean(switch, axis=2, keepdims=True)
    var = jnp.sum((switch - mean_m) ** 2, axis=2) / (m - 1)
    var = jnp.mean(var, axis=1)
    reg = jnp.exp(-var) * alpha

    def cos(a, b):
        dot = jnp.sum(a * b, axis=1)
        na = jnp.sqrt(jnp.sum(a * a, axis=1))
        nb = jnp.sqrt(jnp.sum(b * b, axis=1))
        return dot / jnp.maximum(na * nb, EPS)

    f01 = cos(feature0, feature1) ** 2
    f0bg = cos(feature0, feature_bg) ** 2 * beta
    f1bg = cos(feature1, feature_bg) ** 2 * beta
    return jnp.mean(f01 + f0bg + f1bg + reg), jnp.mean(var)


if __name__ == "__main__":
    key = jax.random.PRNGKey(0)
    k0, k1, k2, k3 = jax.random.split(key, 4)

    # ---- small test (single whole-array block, B < 8) ----
    B, D = 4, 32       # features: (B, D)
    N, M = 8, 16       # switch:   (B, N, M)

    feature0 = jax.random.normal(k0, (B, D), dtype=jnp.float32)
    feature1 = jax.random.normal(k1, (B, D), dtype=jnp.float32)
    feature_bg = jax.random.normal(k2, (B, D), dtype=jnp.float32)
    switch = jax.random.normal(k3, (B, N, M), dtype=jnp.float32)

    loss, var_mean = pallas_loss(feature0, feature1, feature_bg, switch)
    jax.block_until_ready((loss, var_mean))

    ref_loss, ref_var = _reference_loss(feature0, feature1, feature_bg, switch)
    assert jnp.allclose(loss, ref_loss, rtol=1e-4, atol=1e-6), (loss, ref_loss)
    assert jnp.allclose(var_mean, ref_var, rtol=1e-4, atol=1e-6), (var_mean, ref_var)

    # ---- multi-block test (forced small tile: grid=3 with a ragged tail) ----
    k4, k5, k6, k7 = jax.random.split(jax.random.PRNGKey(1), 4)
    B2 = 20
    f0b = jax.random.normal(k4, (B2, D), dtype=jnp.float32)
    f1b = jax.random.normal(k5, (B2, D), dtype=jnp.float32)
    fbgb = jax.random.normal(k6, (B2, D), dtype=jnp.float32)
    swb = jax.random.normal(k7, (B2, N, M), dtype=jnp.float32)

    loss2, var2 = pallas_loss(f0b, f1b, fbgb, swb, block_rows=8)
    jax.block_until_ready((loss2, var2))
    ref_loss2, ref_var2 = _reference_loss(f0b, f1b, fbgb, swb)
    assert jnp.allclose(loss2, ref_loss2, rtol=1e-4, atol=1e-6), (loss2, ref_loss2)
    assert jnp.allclose(var2, ref_var2, rtol=1e-4, atol=1e-6), (var2, ref_var2)

    # ---- default-budget test (exercises the >=2-block cap for B > 8) ----
    loss3, var3 = pallas_loss(f0b, f1b, fbgb, swb)
    jax.block_until_ready((loss3, var3))
    assert jnp.allclose(loss3, ref_loss2, rtol=1e-4, atol=1e-6), (loss3, ref_loss2)
    assert jnp.allclose(var3, ref_var2, rtol=1e-4, atol=1e-6), (var3, ref_var2)

    print("KERNEL_OK")
</pallas_src>

<mosaic_0001>
module attributes {stable_mosaic.version = 11 : i64} {
  func.func @_loss_kernel(%arg0: i32, %arg1: memref<4x32xf32, #tpu.memory_space<vmem>>, %arg2: memref<4x32xf32, #tpu.memory_space<vmem>>, %arg3: memref<4x32xf32, #tpu.memory_space<vmem>>, %arg4: memref<4x8x16xf32, #tpu.memory_space<vmem>>, %arg5: memref<1x8x128xf32, #tpu.memory_space<vmem>>, %arg6: memref<1x8x128xf32, #tpu.memory_space<vmem>>) attributes {dimension_semantics = [#tpu.dimension_semantics<parallel>], iteration_bounds = array<i64: 1>, scalar_prefetch = 0 : i64, scratch_operands = 0 : i64, tpu.core_type = #tpu.core_type<tc>, window_params = [{transform_indices = @transform_0, window_bounds = array<i64: 4, 32>}, {transform_indices = @transform_1, window_bounds = array<i64: 4, 32>}, {transform_indices = @transform_2, window_bounds = array<i64: 4, 32>}, {transform_indices = @transform_3, window_bounds = array<i64: 4, 8, 16>}, {transform_indices = @transform_4, window_bounds = array<i64: 1, 8, 128>}, {transform_indices = @transform_5, window_bounds = array<i64: 1, 8, 128>}]} {
    %c0 = arith.constant 0 : index
    %c0_0 = arith.constant 0 : index
    %0 = vector.load %arg1[%c0, %c0_0] : memref<4x32xf32, #tpu.memory_space<vmem>>, vector<4x32xf32>
    %c0_1 = arith.constant 0 : index
    %c0_2 = arith.constant 0 : index
    %1 = vector.load %arg2[%c0_1, %c0_2] : memref<4x32xf32, #tpu.memory_space<vmem>>, vector<4x32xf32>
    %c0_3 = arith.constant 0 : index
    %c0_4 = arith.constant 0 : index
    %2 = vector.load %arg3[%c0_3, %c0_4] : memref<4x32xf32, #tpu.memory_space<vmem>>, vector<4x32xf32>
    %c0_5 = arith.constant 0 : index
    %c0_6 = arith.constant 0 : index
    %c0_7 = arith.constant 0 : index
    %3 = vector.load %arg4[%c0_5, %c0_6, %c0_7] : memref<4x8x16xf32, #tpu.memory_space<vmem>>, vector<4x8x16xf32>
    %cst = arith.constant dense<0.000000e+00> : vector<4x8xf32>
    %4 = vector.multi_reduction <add>, %3, %cst [2] : vector<4x8x16xf32> to vector<4x8xf32>
    %5 = arith.mulf %3, %3 : vector<4x8x16xf32>
    %cst_8 = arith.constant dense<0.000000e+00> : vector<4x8xf32>
    %6 = vector.multi_reduction <add>, %5, %cst_8 [2] : vector<4x8x16xf32> to vector<4x8xf32>
    %7 = arith.mulf %4, %4 : vector<4x8xf32>
    %cst_9 = arith.constant 6.250000e-02 : f32
    %8 = vector.broadcast %cst_9 : f32 to vector<4x8xf32>
    %9 = arith.mulf %7, %8 : vector<4x8xf32>
    %10 = arith.subf %6, %9 : vector<4x8xf32>
    %cst_10 = arith.constant 0.0666666701 : f32
    %11 = vector.broadcast %cst_10 : f32 to vector<4x8xf32>
    %12 = arith.mulf %10, %11 : vector<4x8xf32>
    %cst_11 = arith.constant dense<0.000000e+00> : vector<4xf32>
    %13 = vector.multi_reduction <add>, %12, %cst_11 [1] : vector<4x8xf32> to vector<4xf32>
    %14 = vector.shape_cast %13 : vector<4xf32> to vector<4x1xf32>
    %cst_12 = arith.constant 8.000000e+00 : f32
    %15 = vector.broadcast %cst_12 : f32 to vector<4x1xf32>
    %16 = arith.divf %14, %15 : vector<4x1xf32>
    %cst_13 = arith.constant 0.000000e+00 : f32
    %17 = vector.broadcast %cst_13 : f32 to vector<4x1xf32>
    %18 = arith.subf %17, %16 : vector<4x1xf32>
    %19 = math.exp %18 : vector<4x1xf32>
    %cst_14 = arith.constant 1.000000e+00 : f32
    %20 = vector.broadcast %cst_14 : f32 to vector<4x1xf32>
    %21 = arith.mulf %19, %20 : vector<4x1xf32>
    %22 = arith.mulf %0, %1 : vector<4x32xf32>
    %cst_15 = arith.constant dense<0.000000e+00> : vector<4xf32>
    %23 = vector.multi_reduction <add>, %22, %cst_15 [1] : vector<4x32xf32> to vector<4xf32>
    %24 = vector.shape_cast %23 : vector<4xf32> to vector<4x1xf32>
    %25 = arith.mulf %0, %2 : vector<4x32xf32>
    %cst_16 = arith.constant dense<0.000000e+00> : vector<4xf32>
    %26 = vector.multi_reduction <add>, %25, %cst_16 [1] : vector<4x32xf32> to vector<4xf32>
    %27 = vector.shape_cast %26 : vector<4xf32> to vector<4x1xf32>
    %28 = arith.mulf %1, %2 : vector<4x32xf32>
    %cst_17 = arith.constant dense<0.000000e+00> : vector<4xf32>
    %29 = vector.multi_reduction <add>, %28, %cst_17 [1] : vector<4x32xf32> to vector<4xf32>
    %30 = vector.shape_cast %29 : vector<4xf32> to vector<4x1xf32>
    %31 = arith.mulf %0, %0 : vector<4x32xf32>
    %cst_18 = arith.constant dense<0.000000e+00> : vector<4xf32>
    %32 = vector.multi_reduction <add>, %31, %cst_18 [1] : vector<4x32xf32> to vector<4xf32>
    %33 = vector.shape_cast %32 : vector<4xf32> to vector<4x1xf32>
    %34 = arith.mulf %1, %1 : vector<4x32xf32>
    %cst_19 = arith.constant dense<0.000000e+00> : vector<4xf32>
    %35 = vector.multi_reduction <add>, %34, %cst_19 [1] : vector<4x32xf32> to vector<4xf32>
    %36 = vector.shape_cast %35 : vector<4xf32> to vector<4x1xf32>
    %37 = arith.mulf %2, %2 : vector<4x32xf32>
    %cst_20 = arith.constant dense<0.000000e+00> : vector<4xf32>
    %38 = vector.multi_reduction <add>, %37, %cst_20 [1] : vector<4x32xf32> to vector<4xf32>
    %39 = vector.shape_cast %38 : vector<4xf32> to vector<4x1xf32>
    %40 = arith.mulf %24, %24 : vector<4x1xf32>
    %41 = arith.mulf %33, %36 : vector<4x1xf32>
    %cst_21 = arith.constant 1.000000e-16 : f32
    %42 = vector.broadcast %cst_21 : f32 to vector<4x1xf32>
    %43 = arith.maximumf %41, %42 : vector<4x1xf32>
    %44 = tpu.reciprocal %43 : vector<4x1xf32> -> vector<4x1xf32>
    %45 = arith.mulf %40, %44 : vector<4x1xf32>
    %46 = arith.mulf %27, %27 : vector<4x1xf32>
    %47 = arith.mulf %33, %39 : vector<4x1xf32>
    %cst_22 = arith.constant 1.000000e-16 : f32
    %48 = vector.broadcast %cst_22 : f32 to vector<4x1xf32>
    %49 = arith.maximumf %47, %48 : vector<4x1xf32>
    %50 = tpu.reciprocal %49 : vector<4x1xf32> -> vector<4x1xf32>
    %51 = arith.mulf %46, %50 : vector<4x1xf32>
    %52 = arith.mulf %30, %30 : vector<4x1xf32>
    %53 = arith.mulf %36, %39 : vector<4x1xf32>
    %cst_23 = arith.constant 1.000000e-16 : f32
    %54 = vector.broadcast %cst_23 : f32 to vector<4x1xf32>
    %55 = arith.maximumf %53, %54 : vector<4x1xf32>
    %56 = tpu.reciprocal %55 : vector<4x1xf32> -> vector<4x1xf32>
    %57 = arith.mulf %52, %56 : vector<4x1xf32>
    %58 = arith.addf %51, %57 : vector<4x1xf32>
    %cst_24 = arith.constant 1.000000e+00 : f32
    %59 = vector.broadcast %cst_24 : f32 to vector<4x1xf32>
    %60 = arith.mulf %59, %58 : vector<4x1xf32>
    %61 = arith.addf %45, %60 : vector<4x1xf32>
    %62 = arith.addf %61, %21 : vector<4x1xf32>
    %63 = tpu.iota {dimensions = array<i32: 0>} : vector<4x1xi32>
    %c4_i32 = arith.constant 4 : i32
    %64 = arith.muli %arg0, %c4_i32 : i32
    %65 = vector.broadcast %64 : i32 to vector<4x1xi32>
    %66 = arith.addi %65, %63 : vector<4x1xi32>
    %c4_i32_25 = arith.constant 4 : i32
    %67 = vector.broadcast %c4_i32_25 : i32 to vector<4x1xi32>
    %68 = arith.cmpi slt, %66, %67 : vector<4x1xi32>
    %cst_26 = arith.constant 0.000000e+00 : f32
    %69 = vector.broadcast %cst_26 : f32 to vector<4x1xf32>
    %70 = arith.select %68, %62, %69 : vector<4x1xi1>, vector<4x1xf32>
    %71 = vector.shape_cast %70 : vector<4x1xf32> to vector<1x4x1xf32>
    %cst_27 = arith.constant dense<0.000000e+00> : vector<1xf32>
    %72 = vector.multi_reduction <add>, %71, %cst_27 [1, 2] : vector<1x4x1xf32> to vector<1xf32>
    %73 = vector.shape_cast %72 : vector<1xf32> to vector<1x1x1xf32>
    %74 = vector.extract %73[0, 0, 0] : f32 from vector<1x1x1xf32>
    %cst_28 = arith.constant 0.000000e+00 : f32
    %75 = vector.broadcast %cst_28 : f32 to vector<4x1xf32>
    %76 = arith.select %68, %16, %75 : vector<4x1xi1>, vector<4x1xf32>
    %77 = vector.shape_cast %76 : vector<4x1xf32> to vector<1x4x1xf32>
    %cst_29 = arith.constant dense<0.000000e+00> : vector<1xf32>
    %78 = vector.multi_reduction <add>, %77, %cst_29 [1, 2] : vector<1x4x1xf32> to vector<1xf32>
    %79 = vector.shape_cast %78 : vector<1xf32> to vector<1x1x1xf32>
    %80 = vector.extract %79[0, 0, 0] : f32 from vector<1x1x1xf32>
    %81 = vector.broadcast %74 : f32 to vector<1x8x128xf32>
    %c0_30 = arith.constant 0 : index
    %c0_31 = arith.constant 0 : index
    %c0_32 = arith.constant 0 : index
    %82 = vector.load %arg5[%c0_30, %c0_31, %c0_32] : memref<1x8x128xf32, #tpu.memory_space<vmem>>, vector<1x8x128xf32>
    tpu.vector_store %arg5[%c0_30, %c0_31, %c0_32], %81 {strides = array<i32>} : memref<1x8x128xf32, #tpu.memory_space<vmem>>, vector<1x8x128xf32>,
    %83 = vector.broadcast %80 : f32 to vector<1x8x128xf32>
    %c0_33 = arith.constant 0 : index
    %c0_34 = arith.constant 0 : index
    %c0_35 = arith.constant 0 : index
    %84 = vector.load %arg6[%c0_33, %c0_34, %c0_35] : memref<1x8x128xf32, #tpu.memory_space<vmem>>, vector<1x8x128xf32>
    tpu.vector_store %arg6[%c0_33, %c0_34, %c0_35], %83 {strides = array<i32>} : memref<1x8x128xf32, #tpu.memory_space<vmem>>, vector<1x8x128xf32>,
    return
  }
  func.func @transform_0(%arg0: i32) -> (i32, i32) {
    %c0_i32 = arith.constant 0 : i32
    %c0_i32_0 = arith.constant 0 : i32
    return %arg0, %c0_i32 : i32, i32
  }
  func.func @transform_1(%arg0: i32) -> (i32, i32) {
    %c0_i32 = arith.constant 0 : i32
    %c0_i32_0 = arith.constant 0 : i32
    return %arg0, %c0_i32 : i32, i32
  }
  func.func @transform_2(%arg0: i32) -> (i32, i32) {
    %c0_i32 = arith.constant 0 : i32
    %c0_i32_0 = arith.constant 0 : i32
    return %arg0, %c0_i32 : i32, i32
  }
  func.func @transform_3(%arg0: i32) -> (i32, i32, i32) {
    %c0_i32 = arith.constant 0 : i32
    %c0_i32_0 = arith.constant 0 : i32
    %c0_i32_1 = arith.constant 0 : i32
    return %arg0, %c0_i32, %c0_i32_0 : i32, i32, i32
  }
  func.func @transform_4(%arg0: i32) -> (i32, i32, i32) {
    %c0_i32 = arith.constant 0 : i32
    %c0_i32_0 = arith.constant 0 : i32
    %c0_i32_1 = arith.constant 0 : i32
    return %arg0, %c0_i32, %c0_i32_0 : i32, i32, i32
  }
  func.func @transform_5(%arg0: i32) -> (i32, i32, i32) {
    %c0_i32 = arith.constant 0 : i32
    %c0_i32_0 = arith.constant 0 : i32
    %c0_i32_1 = arith.constant 0 : i32
    return %arg0, %c0_i32, %c0_i32_0 : i32, i32, i32
  }
}

</mosaic_0001>

<bundles_post_ra>
// kernel: tpu_custom_call.1
= control target key start
LH: loop header
LB: loop body
LE: loop exit
PB: predicated region body
PF: predicated region fallthrough
CT: control target
= control target key end

     0   :  { %11 = vsyncpa [#allocation3], 0  ;;  %s592_s0 = inlined_call_operand.hbm [shape: f32[4,32], index: 0, kind: input, shape index: {}]   ;;  %s593_s1 = inlined_call_operand.hbm [shape: f32[4,32], index: 1, kind: input, shape index: {}]   ;;  %s594_s2 = inlined_call_operand.hbm [shape: f32[4,32], index: 2, kind: input, shape index: {}]   ;;  %s595_s3 = inlined_call_operand.hbm [shape: f32[4,8,16], index: 3, kind: input, shape index: {}]   ;;  %s596_s4 = inlined_call_operand.hbm [shape: f32[1,8,128], index: 4, kind: output, shape index: {0}]   ;;  %s597_s5 = inlined_call_operand.hbm [shape: f32[1,8,128], index: 5, kind: output, shape index: {1}]  }
   0x1   :  { %12 = vsyncpa [#allocation6], 0 }
   0x2   :  { %13 = vsyncpa [#allocation9], 0 }
   0x3   :  { %14 = vsyncpa [#allocation4], 0  ;;  %s32_s20 = sshll.u32 %s593_s1, 4  ;;  %s33_s20 = int_to_ptr.hbm [resolvable:$true] %s32_s20 }
   0x4   :  { %15 = vsyncpa [#allocation12], 0  ;;  %s489_s21 = smov [#allocation5]   ;;  %s21_s25 = sshll.u32 %s592_s0, 4  ;;  %s22_s25 = int_to_ptr.hbm [resolvable:$true] %s21_s25 }
   0x5   :  { %s34_s22 = sshll.u32 %s489_s21, 4  ;;  %s490_s26 = smov [#allocation2]   ;;  %s35_s22 = int_to_ptr.vmem [resolvable:$true] %s34_s22 }
   0x6   :  { %37 = dma.hbm_to_vmem [thread:$0]  %s33_s20, 64, %s35_s22, [#allocation6]  }
   0x7   :  { %s23_s27 = sshll.u32 %s490_s26, 4  ;;  %s43_s30 = sshll.u32 %s594_s2, 4  ;;  %s24_s27 = int_to_ptr.vmem [resolvable:$true] %s23_s27  ;;  %s44_s30 = int_to_ptr.hbm [resolvable:$true] %s43_s30 }
   0x8   :  { %26 = dma.hbm_to_vmem [thread:$0]  %s22_s25, 64, %s24_s27, [#allocation3]  }
   0x9   :  { %s53_s7 = sshll.u32 %s595_s3, 4  ;;  %s491_s8 = smov [#allocation7]   ;;  %s54_s7 = int_to_ptr.hbm [resolvable:$true] %s53_s7 }
   0xa   :  { %s45_s9 = sshll.u32 %s491_s8, 4  ;;  %s492_s0 = smov [#allocation8]   ;;  %s46_s9 = int_to_ptr.vmem [resolvable:$true] %s45_s9 }
   0xb   :  { %48 = dma.hbm_to_vmem [thread:$0]  %s44_s30, 64, %s46_s9, [#allocation6]  }
   0xc   :  { %s55_s10 = sshll.u32 %s492_s0, 4  ;;  %s493_s11 = smov 128   ;;  %s56_s10 = int_to_ptr.vmem [resolvable:$true] %s55_s10 }
   0xd   :  { %s494_s12 = smov 8  }
   0xe   :  { %61 = dma.hbm_to_vmem [thread:$0]  %s54_s7, 512, %s56_s10, [#allocation9], %s493_s11, %s493_s11, %s494_s12  }
   0xf   :  { %479 = dma.done.wait [#allocation3], 64  }
  0x10   :  { %480 = vsyncadd [#allocation3], 4294967232 }
  0x11   :  { %481 = dma.done.wait [#allocation6], 128  }
  0x12   :  { %482 = vsyncadd [#allocation6], 4294967168 }
  0x13   :  { %483 = dma.done.wait [#allocation9], 512  }
  0x14   :  { %484 = vsyncadd [#allocation9], 4294966784  ;;  %vm85_vm0 = vcmask 130048   ;;  %v83_v0 = vld [vmem:[#allocation8 + $0x10] sm:$0xff]  ;;  %v81_v1 = vld [vmem:[#allocation8] sm:$0xff]  ;;  %vm163_vm1 = vcmask 257024   ;;  %v134_v43 = vlaneseq }
  0x15   :  { %v92_v2 = vsel %vm85_vm0, %v83_v0, 0.0  ;;  %v86_v3 = vsel %vm85_vm0, %v81_v1, 0.0  ;;  %v98_v4 = vmul.f32 %v81_v1, %v81_v1  ;;  %v84_v6 = vld [vmem:[#allocation8 + $0x18] sm:$0xff]  ;;  %v82_v7 = vld [vmem:[#allocation8 + $0x8] sm:$0xff]  ;;  %v100_v12 = vmul.f32 %v83_v0, %v83_v0  ;;  %v78_v18 = vld [vmem:[#allocation2] sm:$0xf] }
  0x16   :  { %93 = vadd.xlane.f32.xlu1 %v92_v2  ;;  %87 = vadd.xlane.f32.xlu0 %v86_v3  ;;  %v99_v8 = vmul.f32 %v82_v7, %v82_v7  ;;  %v95_v9 = vsel %vm85_vm0, %v84_v6, 0.0  ;;  %v89_v10 = vsel %vm85_vm0, %v82_v7, 0.0  ;;  %v101_v13 = vmul.f32 %v84_v6, %v84_v6  ;;  %v80_v16 = vld [vmem:[#allocation7] sm:$0xf]  ;;  %v79_v17 = vld [vmem:[#allocation5] sm:$0xf] }
  0x17   :  { %v102_v5 = vsel %vm85_vm0, %v98_v4, 0.0  ;;  %v108_v15 = vsel %vm85_vm0, %v100_v12, 0.0  ;;  %v183_v19 = vmul.f32 %v80_v16, %v80_v16  ;;  %v179_v20 = vmul.f32 %v79_v17, %v79_v17  ;;  %s496_s2 = smov [#allocation10]   ;;  %s284_s15 = sshll.u32 %s596_s4, 4  ;;  %s285_s15 = int_to_ptr.hbm [resolvable:$true] %s284_s15 }
  0x18   :  { %103 = vadd.xlane.f32.xlu2 %v102_v5  ;;  %v105_v11 = vsel %vm85_vm0, %v99_v8, 0.0  ;;  %v111_v14 = vsel %vm85_vm0, %v101_v13, 0.0  ;;  %v175_v21 = vmul.f32 %v78_v18, %v78_v18  ;;  %v171_v25 = vmul.f32 %v80_v16, %v79_v17  ;;  %s282_s3 = sshll.u32 %s496_s2, 4  ;;  %s497_s16 = smov [#allocation11]   ;;  %s283_s3 = int_to_ptr.vmem [resolvable:$true] %s282_s3 }
  0x19   :  { %v184_v22 = vsel %vm163_vm1, %v183_v19, 0.0  ;;  %v180_v23 = vsel %vm163_vm1, %v179_v20, 0.0  ;;  %v167_v26 = vmul.f32 %v80_v16, %v78_v18  ;;  %v162_v29 = vmul.f32 %v79_v17, %v78_v18  ;;  %s293_s17 = sshll.u32 %s497_s16, 4  ;;  %s295_s20 = sshll.u32 %s597_s5, 4  ;;  %s294_s17 = int_to_ptr.vmem [resolvable:$true] %s293_s17  ;;  %s296_s20 = int_to_ptr.hbm [resolvable:$true] %s295_s20 }
  0x1a   :  { %v176_v24 = vsel %vm163_vm1, %v175_v21, 0.0  ;;  %v172_v27 = vsel %vm163_vm1, %v171_v25, 0.0  ;;  %v135_v49 = vand.u32 127, %v134_v43  ;;  %vm140_vm2 = vcmask 1041409  }
  0x1b   :  { %v168_v28 = vsel %vm163_vm1, %v167_v26, 0.0  ;;  %v164_v30 = vsel %vm163_vm1, %v162_v29, 0.0  ;;  %vm142_vm3 = vcmask 1042434   ;;  %vm144_vm4 = vcmask 1043459  }
  0x1c   :  { %vm147_vm5 = vcmask 60416  }
  0x1e   :  { %96 = vadd.xlane.f32.xlu1 %v95_v9  ;;  %90 = vadd.xlane.f32.xlu0 %v89_v10  ;;  %v495_v9 = vmov 8.0  }
  0x1f   :  { %325 = vrcp.f32 %v495_v9 }
  0x20   :  { %106 = vadd.xlane.f32.xlu2 %v105_v11 }
  0x25   :  { %v326_v11 = vpop.eup %325 }
  0x26   :  { %112 = vadd.xlane.f32.xlu1 %v111_v14  ;;  %109 = vadd.xlane.f32.xlu0 %v108_v15  ;;  %v152_v14 = vmul.f32 8.0, %v326_v11  ;;  %vm156_vm7 = vweird.f32 %v326_v11 }
  0x28   :  { %177 = vadd.xlane.f32.xlu2 %v176_v24  ;;  %v153_v17 = vsub.f32 1.0, %v152_v14 }
  0x2a   :  { %v154_v21 = vmul.f32 %v326_v11, %v153_v17 }
  0x2c   :  { %v155_v26 = vadd.f32 %v326_v11, %v154_v21 }
  0x2e   :  { %185 = vadd.xlane.f32.xlu1 %v184_v22  ;;  %181 = vadd.xlane.f32.xlu0 %v180_v23 }
  0x36   :  { %173 = vadd.xlane.f32.xlu1 %v172_v27  ;;  %169 = vadd.xlane.f32.xlu0 %v168_v28 }
  0x89   :  { %v94_v31 = vpop.xlane.xlu1 %93  ;;  %v88_v32 = vpop.xlane.xlu0 %87 }
  0x8a   :  { %v114_v34 = vmul.f32 %v88_v32, %v88_v32  ;;  %v116_v40 = vmul.f32 %v94_v31, %v94_v31  ;;  %v245_v31 = vshrl.u32 %v134_v43, 7 }
  0x8b   :  { %v104_v33 = vpop.xlane.xlu2 %103 }
  0x8c   :  { %v118_v35 = vmul.f32 0.0625, %v114_v34  ;;  %v120_v46 = vmul.f32 0.0625, %v116_v40  ;;  %vm249_vm15 = vcmp.lt.s32.totalorder %v245_v31, 4 }
  0x8e   :  { %v122_v44 = vsub.f32 %v104_v33, %v118_v35 }
  0x90   :  { %v126_v50 = vmul.f32 0.06666667, %v122_v44 }
  0x91   :  { %v97_v36 = vpop.xlane.xlu1 %96  ;;  %v91_v37 = vpop.xlane.xlu0 %90 }
  0x92   :  { %v115_v38 = vmul.f32 %v91_v37, %v91_v37  ;;  %v117_v41 = vmul.f32 %v97_v36, %v97_v36  ;;  %v136_v58 = vperm.slane %v126_v50, %v135_v49  ;;  %v157_v36 = vsel %vm156_vm7, %v326_v11, %v155_v26 }
  0x93   :  { %v107_v39 = vpop.xlane.xlu2 %106 }
  0x94   :  { %v119_v42 = vmul.f32 0.0625, %v115_v38  ;;  %v121_v47 = vmul.f32 0.0625, %v117_v41 }
  0x96   :  { %v123_v45 = vsub.f32 %v107_v39, %v119_v42 }
  0x98   :  { %v127_v48 = vmul.f32 0.06666667, %v123_v45 }
  0x99   :  { %v113_v51 = vpop.xlane.xlu1 %112  ;;  %v110_v52 = vpop.xlane.xlu0 %109 }
  0x9a   :  { %v125_v53 = vsub.f32 %v113_v51, %v121_v47  ;;  %v124_v54 = vsub.f32 %v110_v52, %v120_v46  ;;  %v137_v55 = vperm.slane %v127_v48, %v135_v49 }
  0x9b   :  { %v178_v3 = vpop.xlane.xlu2 %177 }
  0x9c   :  { %v129_v56 = vmul.f32 0.06666667, %v125_v53  ;;  %v128_v57 = vmul.f32 0.06666667, %v124_v54  ;;  %v141_v61 = vsel %vm140_vm2, %v137_v55, %v136_v58  ;;  %vm251_vm2 = vcmask 3072  }
  0x9e   :  { %v139_v59 = vperm.slane %v129_v56, %v135_v49  ;;  %v138_v60 = vperm.slane %v128_v57, %v135_v49 }
  0xa0   :  { %v143_v62 = vsel %vm142_vm3, %v138_v60, %v141_v61 }
  0xa1   :  { %v145_v63 = vsel %vm144_vm4, %v139_v59, %v143_v62  ;;  %v186_v1 = vpop.xlane.xlu1 %185  ;;  %v182_v2 = vpop.xlane.xlu0 %181 }
  0xa2   :  { %v148_v0 = vsel %vm147_vm5, %v145_v63, 0.0  ;;  %v224_v4 = vmul.f32 %v186_v1, %v182_v2  ;;  %v206_v5 = vmul.f32 %v186_v1, %v178_v3  ;;  %v188_v8 = vmul.f32 %v182_v2, %v178_v3 }
  0xa3   :  { %149 = vadd.xlane.f32.xlu2 %v148_v0 }
  0xa4   :  { %v225_v6 = vmax.f32 %v224_v4, 1e-16  ;;  %v207_v7 = vmax.f32 %v206_v5, 1e-16  ;;  %v549_v10 = vmax.f32 %v188_v8, 1e-16 }
  0xa6   :  { %327 = vrcp.f32 %v225_v6  ;;  %vm231_vm6 = vweird.f32 %v225_v6  ;;  %v235_v25 = vand.u32 2147483647, %v225_v6  ;;  %v237_v28 = vand.u32 2147483648, %v225_v6 }
  0xa7   :  { %329 = vrcp.f32 %v207_v7  ;;  %vm213_vm9 = vweird.f32 %v207_v7  ;;  %v217_v29 = vand.u32 2147483647, %v207_v7  ;;  %vm195_vm0 = vweird.f32 %v549_v10 }
  0xa8   :  { %331 = vrcp.f32 %v549_v10  ;;  %vm563_vm13 = vcmp.eq.f32.partialorder %v235_v25, 8.507059e+37  ;;  %v238_v39 = vor.u32 1.1754944e-38, %v237_v28  ;;  %v199_v49 = vand.u32 2147483647, %v549_v10 }
  0xa9   :  { %v174_v40 = vpop.xlane.xlu1 %173  ;;  %vm567_vm14 = vcmp.eq.f32.partialorder %v217_v29, 8.507059e+37  ;;  %v170_v43 = vpop.xlane.xlu0 %169  ;;  %v201_v50 = vand.u32 2147483648, %v549_v10 }
  0xaa   :  { %v223_v51 = vmul.f32 %v174_v40, %v174_v40  ;;  %v205_v52 = vmul.f32 %v170_v43, %v170_v43  ;;  %vm200_vm4 = vcmp.eq.f32.partialorder %v199_v49, 8.507059e+37 }
  0xab   :  { %165 = vadd.xlane.f32.xlu2 %v164_v30  ;;  %v219_v30 = vand.u32 2147483648, %v207_v7  ;;  %v202_v60 = vor.u32 1.1754944e-38, %v201_v50 }
  0xac   :  { %v328_v12 = vpop.eup %327 }
  0xad   :  { %v330_v13 = vpop.eup %329  ;;  %v227_v15 = vmul.f32 %v328_v12, %v225_v6  ;;  %vm232_vm8 = vweird.f32 %v328_v12  ;;  %v220_v42 = vor.u32 1.1754944e-38, %v219_v30 }
  0xae   :  { %v209_v16 = vmul.f32 %v330_v13, %v207_v7  ;;  %v332_v18 = vpop.eup %331  ;;  %vm214_vm10 = vweird.f32 %v330_v13  ;;  %vm554_vm11 = vmor %vm231_vm6, %vm232_vm8 }
  0xaf   :  { %v228_v19 = vsub.f32 1.0, %v227_v15  ;;  %v191_v22 = vmul.f32 %v332_v18, %v549_v10  ;;  %vm558_vm12 = vmor %vm213_vm9, %vm214_vm10  ;;  %vm196_vm1 = vweird.f32 %v332_v18 }
  0xb0   :  { %v210_v20 = vsub.f32 1.0, %v209_v16  ;;  %vm197_vm3 = vmor %vm195_vm0, %vm196_vm1 }
  0xb1   :  { %v229_v23 = vmul.f32 %v328_v12, %v228_v19  ;;  %v192_v27 = vsub.f32 1.0, %v191_v22 }
  0xb2   :  { %v211_v24 = vmul.f32 %v330_v13, %v210_v20 }
  0xb3   :  { %v230_v32 = vadd.f32 %v328_v12, %v229_v23  ;;  %v193_v37 = vmul.f32 %v332_v18, %v192_v27 }
  0xb4   :  { %v212_v34 = vadd.f32 %v330_v13, %v211_v24 }
  0xb5   :  { %v234_v45 = vsel %vm554_vm11, %v328_v12, %v230_v32  ;;  %v194_v48 = vadd.f32 %v332_v18, %v193_v37 }
  0xb6   :  { %v216_v46 = vsel %vm558_vm12, %v330_v13, %v212_v34  ;;  %v239_v55 = vsel %vm563_vm13, %v238_v39, %v234_v45 }
  0xb7   :  { %v221_v56 = vsel %vm567_vm14, %v220_v42, %v216_v46  ;;  %v198_v59 = vsel %vm197_vm3, %v332_v18, %v194_v48  ;;  %v240_v61 = vmul.f32 %v239_v55, %v223_v51 }
  0xb8   :  { %v222_v62 = vmul.f32 %v221_v56, %v205_v52  ;;  %v203_v1 = vsel %vm200_vm4, %v202_v60, %v198_v59 }
  0xba   :  { %v241_v2 = vadd.f32 %v240_v61, %v222_v62 }
 0x116   :  { %v150_v44 = vpop.xlane.xlu2 %149 }
 0x117   :  { %v158_v47 = vmul.f32 %v157_v36, %v150_v44 }
 0x119   :  { %v159_v53 = vsub.f32 0.0, %v158_v47  ;;  %v262_v54 = vsel %vm249_vm15, %v158_v47, 0.0 }
 0x11a   :  { %v263_v57 = vsel %vm251_vm2, %v262_v54, 0.0 }
 0x11b   :  { %v160_v58 = vmul.f32 1.442695, %v159_v53  ;;  %264 = vadd.xlane.f32.xlu1 %v263_v57 }
 0x11d   :  { %333 = vpow2.f32 %v160_v58 }
 0x11e   :  { %v166_v63 = vpop.xlane.xlu2 %165 }
 0x11f   :  { %v187_v0 = vmul.f32 %v166_v63, %v166_v63 }
 0x121   :  { %v204_v3 = vmul.f32 %v203_v1, %v187_v0 }
 0x123   :  { %v334_v4 = vpop.eup %333  ;;  %v242_v5 = vadd.f32 %v241_v2, %v204_v3 }
 0x125   :  { %v243_v6 = vadd.f32 %v334_v4, %v242_v5 }
 0x127   :  { %v250_v7 = vsel %vm249_vm15, %v243_v6, 0.0 }
 0x128   :  { %v252_v8 = vsel %vm251_vm2, %v250_v7, 0.0 }
 0x129   :  { %253 = vadd.xlane.f32.xlu0 %v252_v8 }
 0x18e   :  { %v265_v9 = vpop.xlane.xlu1 %264 }
 0x18f   :  { %v266_v10 = vrot.slane %v265_v9, 4 }
 0x191   :  { %v267_v11 = vadd.f32 %v266_v10, %v265_v9 }
 0x193   :  { %v268_v12 = vrot.slane %v267_v11, 2 }
 0x195   :  { %v269_v16 = vadd.f32 %v268_v12, %v267_v11 }
 0x197   :  { %v270_v19 = vrot.slane %v269_v16, 1 }
 0x199   :  { %v271_v22 = vadd.f32 %v270_v19, %v269_v16 }
 0x19c   :  { %v254_v13 = vpop.xlane.xlu0 %253 }
 0x19d   :  { %v255_v14 = vrot.slane %v254_v13, 4 }
 0x19f   :  { %v256_v15 = vadd.f32 %v255_v14, %v254_v13 }
 0x1a1   :  { %v257_v17 = vrot.slane %v256_v15, 2 }
 0x1a3   :  { %v258_v18 = vadd.f32 %v257_v17, %v256_v15 }
 0x1a5   :  { %v259_v20 = vrot.slane %v258_v18, 1 }
 0x1a7   :  { %v260_v21 = vadd.f32 %v259_v20, %v258_v18 }
 0x1a9   :  { %312 = vpush %v260_v21 }
 0x1aa   :  { %314 = vpush %v271_v22 }
 0x1da   :  { %s313_s21 = spop %312 }
 0x1db   :  { %v273_v23 = vstv %s313_s21  ;;  %s315_s22 = spop %314 }
 0x1dc   :  { %274 = vst [vmem:[#allocation10] sm:$0xff] %v273_v23  ;;  %v275_v24 = vstv %s315_s22 }
 0x1dd   :  { %276 = vst [vmem:[#allocation11] sm:$0xff] %v275_v24  ;;  %287 = dma.vmem_to_hbm [thread:$0]  %s283_s3, 128, %s285_s15, [#allocation4]  }
 0x1de   :  { %298 = dma.vmem_to_hbm [thread:$0]  %s294_s17, 128, %s296_s20, [#allocation12]  }
 0x1df   :  { %485 = dma.done.wait [#allocation4], 128  }
 0x1e0   :  { %486 = vsyncadd [#allocation4], 4294967168 }
 0x1e1   :  { %487 = dma.done.wait [#allocation12], 128  }
 0x1e2   :  { %488 = vsyncadd [#allocation12], 4294967168 }
 0x1e3   :  { %307 = vsyncpa [#allocation3], 1 }
 0x1e4   :  { %308 = vsyncpa [#allocation6], 1 }
 0x1e5   :  { %309 = vsyncpa [#allocation9], 1 }
 0x1e6   :  { %310 = vsyncpa [#allocation4], 1 }
 0x1e7   :  { %311 = vsyncpa [#allocation12], 1 }

</bundles_post_ra>
